<compile_context>
chip_gen: v7x
topology: tpu7x:2x2x1
jax: 0.10.0
libtpu: 0.0.40
codegen_flags: <defaults>
</compile_context>

<pallas_src>
import jax
import jax.numpy as jnp
import numpy as np
from jax import lax
from jax.experimental import pallas as pl
from jax.experimental.pallas import tpu as pltpu

# ----------------------------- model config ---------------------------------
DIM = 32                      # D
DIM_HEAD = 16                 # d
HEADS = 4                     # h
INNER = DIM_HEAD * HEADS      # 64
SCALE = DIM_HEAD ** (-0.5)
LN_EPS = 1e-5

B = 2
N1 = 16                       # image tokens
N2 = 8                        # latent tokens
N_KV = N1 + N2                # 24
R = B * N_KV                  # 48 kv rows
NQ = B * N2                   # 16 query rows

NEG_MASK = -10000.0           # PyTorch masked_fill value
NEG_XBATCH = -1.0e9           # cross-batch block bias (exp underflows to exactly 0)


# ------------------------------ Pallas kernel --------------------------------
def _seq_compressor_kernel(kv_ref, ln_ref, w_ref, bias_ref, out_ref):
    # kv_ref  : (R, DIM)         raw activations, rows = [all x rows ; all latent rows]
    # ln_ref  : (2R, DIM)        rows [0:R) = per-row gamma, [R:2R) = per-row beta
    # w_ref   : (DIM, 4*INNER)   lanes [0:64)=Wq*scale, [64:128)=Wk, [128:256)=Wv@Wo_blockdiag
    # bias_ref: (HEADS*NQ, R)    additive logits bias, already broadcast over heads
    # out_ref : (NQ, DIM)

    kv = kv_ref[...]
    gamma = ln_ref[:R, :]
    beta = ln_ref[R:, :]

    # Single LayerNorm over all 48 rows (per-row gamma/beta select media vs latents params).
    mu = jnp.mean(kv, axis=-1, keepdims=True)
    xc = kv - mu
    var = jnp.mean(xc * xc, axis=-1, keepdims=True)
    kvn = xc * lax.rsqrt(var + LN_EPS) * gamma + beta                      # (R, DIM)

    # One fused 256-lane MXU projection: [Q*scale | K | V @ Wo_bd].
    proj = jnp.dot(kvn, w_ref[...], preferred_element_type=jnp.float32)    # (R, 4*INNER)

    # Per-head logits for BOTH batches at once, stacked along sublanes -> (HEADS*NQ, R).
    sims = []
    for h in range(HEADS):
        qh = proj[B * N1:, h * DIM_HEAD:(h + 1) * DIM_HEAD]                # (NQ, d)  latent rows
        kh = proj[:, INNER + h * DIM_HEAD: INNER + (h + 1) * DIM_HEAD]     # (R, d)
        sims.append(lax.dot_general(qh, kh, (((1,), (1,)), ((), ())),
                                    preferred_element_type=jnp.float32))   # (NQ, R)
    sim = jnp.concatenate(sims, axis=0) + bias_ref[...]                    # (HEADS*NQ, R)

    # One stable softmax over the whole slab.  Softmax is shift-invariant per row, so a single
    # post-bias row-max subtraction reproduces the reference (pre-mask max + masked_fill)
    # semantics: masked / cross-batch columns underflow to exactly 0 in f32.
    sim = sim - jnp.max(sim, axis=-1, keepdims=True)
    p = jnp.exp(sim)
    denom = jnp.sum(p, axis=-1, keepdims=True)          # >= 1 (row max contributes exp(0) = 1)
    inv = pl.reciprocal(denom, approx=True)
    inv = inv * (2.0 - denom * inv)                     # one Newton step -> ~1 ulp
    attn = p * inv                                      # (HEADS*NQ, R)

    # Wo is already folded into the V lanes of proj (block-diagonal Wo), so the epilogue is
    # HEADS accumulating (NQ, R) @ (R, DIM) matmuls and ONE contiguous output store.
    out = jnp.dot(attn[:NQ, :], proj[:, 2 * INNER: 2 * INNER + DIM],
                  preferred_element_type=jnp.float32)
    for h in range(1, HEADS):
        out = out + jnp.dot(attn[h * NQ:(h + 1) * NQ, :],
                            proj[:, 2 * INNER + h * DIM: 2 * INNER + (h + 1) * DIM],
                            preferred_element_type=jnp.float32)
    out_ref[...] = out


# ----------------------------- host-side packing ------------------------------
def _pack_inputs(x, latents, mask, params):
    gm, bm, gl, bl, wq, wkv, wo = params

    # (1) kv rows: all x rows (batch-major), then all latent rows (batch-major).
    kv = jnp.concatenate([x.reshape(B * N1, DIM), latents.reshape(B * N2, DIM)], axis=0)

    # (2) per-row LayerNorm params (media rows -> norm_media, latent rows -> norm_latents).
    gamma_rows = jnp.concatenate([jnp.tile(gm, (B * N1, 1)), jnp.tile(gl, (B * N2, 1))], axis=0)
    beta_rows = jnp.concatenate([jnp.tile(bm, (B * N1, 1)), jnp.tile(bl, (B * N2, 1))], axis=0)
    ln = jnp.concatenate([gamma_rows, beta_rows], axis=0)                  # (2R, DIM)

    # (3) fused weight: [Wq*scale | Wk | Wv @ Wo_blockdiag]  -> (DIM, 4*INNER).
    wo_bd = jnp.zeros((INNER, HEADS * DIM), wo.dtype)
    for h in range(HEADS):
        wo_bd = wo_bd.at[h * DIM_HEAD:(h + 1) * DIM_HEAD,
                         h * DIM:(h + 1) * DIM].set(wo[h * DIM_HEAD:(h + 1) * DIM_HEAD])
    w_all = jnp.concatenate([wq * SCALE, wkv[:, :INNER], wkv[:, INNER:] @ wo_bd], axis=1)

    # (4) additive logit bias: same-batch & visible -> 0, same-batch & masked -> -1e4,
    #     cross-batch -> -1e9; then broadcast over heads (row layout matches the sim slab).
    col_batch = jnp.concatenate([jnp.repeat(jnp.arange(B), N1),
                                 jnp.repeat(jnp.arange(B), N2)])           # (R,)
    col_tok = jnp.concatenate([jnp.tile(jnp.arange(N1), B),
                               jnp.tile(N1 + jnp.arange(N2), B)])          # (R,)
    col_keep = mask[col_batch, col_tok]                                    # (R,) 0/1 float
    row_batch = jnp.repeat(jnp.arange(B), N2)                              # (NQ,)
    same = row_batch[:, None] == col_batch[None, :]                        # (NQ, R)
    bias = jnp.where(same, (1.0 - col_keep)[None, :] * NEG_MASK, NEG_XBATCH)
    bias = jnp.tile(bias, (HEADS, 1)).astype(jnp.float32)                  # (HEADS*NQ, R)

    return kv, ln, w_all, bias


@jax.jit
def seq_compressor_attention(x, latents, mask, params):
    """Single pallas_call; 4 input DMAs + 1 output, everything VMEM-resident."""
    kv, ln, w_all, bias = _pack_inputs(x, latents, mask, params)
    vmem = pl.BlockSpec(memory_space=pltpu.MemorySpace.VMEM)
    out = pl.pallas_call(
        _seq_compressor_kernel,
        out_shape=jax.ShapeDtypeStruct((NQ, DIM), jnp.float32),
        in_specs=[vmem] * 4,
        out_specs=vmem,
    )(kv, ln, w_all, bias)
    return out.reshape(B, N2, DIM)


# --------------------------- pure-JAX reference ------------------------------
def reference(x, latents, mask, params):
    gm, bm, gl, bl, wq, wkv, wo = params

    def layernorm(t, g, b):
        mu = jnp.mean(t, axis=-1, keepdims=True)
        var = jnp.mean((t - mu) ** 2, axis=-1, keepdims=True)
        return (t - mu) / jnp.sqrt(var + LN_EPS) * g + b

    xn = layernorm(x, gm[0], bm[0])
    latn = layernorm(latents, gl[0], bl[0])
    q = latn @ wq                                   # (B, N2, INNER)
    kv_in = jnp.concatenate([xn, latn], axis=1)     # (B, N_KV, D)
    kv = kv_in @ wkv
    k, v = kv[..., :INNER], kv[..., INNER:]

    def split_heads(t):
        bsz, n, _ = t.shape
        return t.reshape(bsz, n, HEADS, DIM_HEAD).transpose(0, 2, 1, 3)

    qh, kh, vh = split_heads(q) * SCALE, split_heads(k), split_heads(v)
    sim = jnp.einsum('bhid,bhjd->bhij', qh, kh)
    sim = sim - jnp.max(sim, axis=-1, keepdims=True)
    m = mask[:, None, None, :]
    sim = jnp.where(m == 0.0, -10000.0, sim)
    attn = jax.nn.softmax(sim, axis=-1)
    out = jnp.einsum('bhij,bhjd->bhid', attn, vh)
    out = out.transpose(0, 2, 1, 3).reshape(x.shape[0], N2, INNER)
    return out @ wo


# ---------------------------------- main -------------------------------------
if __name__ == "__main__":
    key = jax.random.PRNGKey(0)
    keys = jax.random.split(key, 10)

    x = jax.random.normal(keys[0], (B, N1, DIM), dtype=jnp.float32)
    latents = jax.random.normal(keys[1], (B, N2, DIM), dtype=jnp.float32)
    # deterministic 0/1 mask (keep most positions, mask a few image tokens)
    mask = (jax.random.uniform(keys[2], (B, N_KV)) > 0.2).astype(jnp.float32)
    mask = mask.at[:, N1:].set(1.0)  # latents always visible (precondition)

    # Deterministic synthetic parameters (no checkpoint loading).
    gm = 1.0 + 0.1 * jax.random.normal(keys[3], (1, DIM), dtype=jnp.float32)
    bm = 0.1 * jax.random.normal(keys[4], (1, DIM), dtype=jnp.float32)
    gl = 1.0 + 0.1 * jax.random.normal(keys[5], (1, DIM), dtype=jnp.float32)
    bl = 0.1 * jax.random.normal(keys[6], (1, DIM), dtype=jnp.float32)
    wq = jax.random.normal(keys[7], (DIM, INNER), dtype=jnp.float32) / np.sqrt(DIM)
    wkv = jax.random.normal(keys[8], (DIM, 2 * INNER), dtype=jnp.float32) / np.sqrt(DIM)
    wo = jax.random.normal(keys[9], (INNER, DIM), dtype=jnp.float32) / np.sqrt(INNER)
    params = (gm, bm, gl, bl, wq, wkv, wo)

    out = seq_compressor_attention(x, latents, mask, params)
    out = jax.block_until_ready(out)

    ref = jax.block_until_ready(reference(x, latents, mask, params))
    np.testing.assert_allclose(np.asarray(out), np.asarray(ref),
                               rtol=1e-4, atol=1e-4)

    print("KERNEL_OK")
</pallas_src>

<mosaic_0001>
module attributes {stable_mosaic.version = 11 : i64} {
  func.func @_seq_compressor_kernel(%arg0: memref<48x32xf32, #tpu.memory_space<vmem>>, %arg1: memref<96x32xf32, #tpu.memory_space<vmem>>, %arg2: memref<32x256xf32, #tpu.memory_space<vmem>>, %arg3: memref<64x48xf32, #tpu.memory_space<vmem>>, %arg4: memref<16x32xf32, #tpu.memory_space<vmem>>) attributes {dimension_semantics = [], scalar_prefetch = 0 : i64, scratch_operands = 0 : i64, tpu.core_type = #tpu.core_type<tc>} {
    %c0 = arith.constant 0 : index
    %c0_0 = arith.constant 0 : index
    %0 = vector.load %arg0[%c0, %c0_0] : memref<48x32xf32, #tpu.memory_space<vmem>>, vector<48x32xf32>
    %c0_1 = arith.constant 0 : index
    %c0_2 = arith.constant 0 : index
    %1 = vector.load %arg1[%c0_1, %c0_2] : memref<96x32xf32, #tpu.memory_space<vmem>>, vector<48x32xf32>
    %c48 = arith.constant 48 : index
    %c0_3 = arith.constant 0 : index
    %2 = vector.load %arg1[%c48, %c0_3] : memref<96x32xf32, #tpu.memory_space<vmem>>, vector<48x32xf32>
    %cst = arith.constant dense<0.000000e+00> : vector<48xf32>
    %3 = vector.multi_reduction <add>, %0, %cst [1] : vector<48x32xf32> to vector<48xf32>
    %4 = vector.shape_cast %3 : vector<48xf32> to vector<48x1xf32>
    %cst_4 = arith.constant 3.200000e+01 : f32
    %5 = vector.broadcast %cst_4 : f32 to vector<48x1xf32>
    %6 = arith.divf %4, %5 : vector<48x1xf32>
    %7 = vector.broadcast %6 : vector<48x1xf32> to vector<48x32xf32>
    %8 = arith.subf %0, %7 : vector<48x32xf32>
    %9 = arith.mulf %8, %8 : vector<48x32xf32>
    %cst_5 = arith.constant dense<0.000000e+00> : vector<48xf32>
    %10 = vector.multi_reduction <add>, %9, %cst_5 [1] : vector<48x32xf32> to vector<48xf32>
    %11 = vector.shape_cast %10 : vector<48xf32> to vector<48x1xf32>
    %cst_6 = arith.constant 3.200000e+01 : f32
    %12 = vector.broadcast %cst_6 : f32 to vector<48x1xf32>
    %13 = arith.divf %11, %12 : vector<48x1xf32>
    %cst_7 = arith.constant 9.99999974E-6 : f32
    %14 = vector.broadcast %cst_7 : f32 to vector<48x1xf32>
    %15 = arith.addf %13, %14 : vector<48x1xf32>
    %16 = math.rsqrt %15 : vector<48x1xf32>
    %17 = vector.broadcast %16 : vector<48x1xf32> to vector<48x32xf32>
    %18 = arith.mulf %8, %17 : vector<48x32xf32>
    %19 = arith.mulf %18, %1 : vector<48x32xf32>
    %20 = arith.addf %19, %2 : vector<48x32xf32>
    %c0_8 = arith.constant 0 : index
    %c0_9 = arith.constant 0 : index
    %21 = vector.load %arg2[%c0_8, %c0_9] : memref<32x256xf32, #tpu.memory_space<vmem>>, vector<32x256xf32>
    %cst_10 = arith.constant dense<0.000000e+00> : vector<48x256xf32>
    %22 = tpu.matmul %20, %21, %cst_10 {dimension_numbers = #tpu.dot_dimension_numbers<[1], [0], [0], [1], [0, 0, 1, 1], [], []>} : vector<48x32xf32>, vector<32x256xf32>, vector<48x256xf32> -> vector<48x256xf32>
    %23 = vector.extract_strided_slice %22 {offsets = [32, 0], sizes = [16, 16], strides = [1, 1]} : vector<48x256xf32> to vector<16x16xf32>
    %24 = vector.extract_strided_slice %22 {offsets = [0, 64], sizes = [48, 16], strides = [1, 1]} : vector<48x256xf32> to vector<48x16xf32>
    %cst_11 = arith.constant dense<0.000000e+00> : vector<16x48xf32>
    %25 = tpu.matmul %23, %24, %cst_11 {dimension_numbers = #tpu.dot_dimension_numbers<[1], [1], [0], [0], [0, 0, 1, 0], [], []>} : vector<16x16xf32>, vector<48x16xf32>, vector<16x48xf32> -> vector<16x48xf32>
    %26 = vector.extract_strided_slice %22 {offsets = [32, 16], sizes = [16, 16], strides = [1, 1]} : vector<48x256xf32> to vector<16x16xf32>
    %27 = vector.extract_strided_slice %22 {offsets = [0, 80], sizes = [48, 16], strides = [1, 1]} : vector<48x256xf32> to vector<48x16xf32>
    %cst_12 = arith.constant dense<0.000000e+00> : vector<16x48xf32>
    %28 = tpu.matmul %26, %27, %cst_12 {dimension_numbers = #tpu.dot_dimension_numbers<[1], [1], [0], [0], [0, 0, 1, 0], [], []>} : vector<16x16xf32>, vector<48x16xf32>, vector<16x48xf32> -> vector<16x48xf32>
    %29 = vector.extract_strided_slice %22 {offsets = [32, 32], sizes = [16, 16], strides = [1, 1]} : vector<48x256xf32> to vector<16x16xf32>
    %30 = vector.extract_strided_slice %22 {offsets = [0, 96], sizes = [48, 16], strides = [1, 1]} : vector<48x256xf32> to vector<48x16xf32>
    %cst_13 = arith.constant dense<0.000000e+00> : vector<16x48xf32>
    %31 = tpu.matmul %29, %30, %cst_13 {dimension_numbers = #tpu.dot_dimension_numbers<[1], [1], [0], [0], [0, 0, 1, 0], [], []>} : vector<16x16xf32>, vector<48x16xf32>, vector<16x48xf32> -> vector<16x48xf32>
    %32 = vector.extract_strided_slice %22 {offsets = [32, 48], sizes = [16, 16], strides = [1, 1]} : vector<48x256xf32> to vector<16x16xf32>
    %33 = vector.extract_strided_slice %22 {offsets = [0, 112], sizes = [48, 16], strides = [1, 1]} : vector<48x256xf32> to vector<48x16xf32>
    %cst_14 = arith.constant dense<0.000000e+00> : vector<16x48xf32>
    %34 = tpu.matmul %32, %33, %cst_14 {dimension_numbers = #tpu.dot_dimension_numbers<[1], [1], [0], [0], [0, 0, 1, 0], [], []>} : vector<16x16xf32>, vector<48x16xf32>, vector<16x48xf32> -> vector<16x48xf32>
    %35 = tpu.concatenate %25, %28, %31, %34 in 0 : vector<16x48xf32>, vector<16x48xf32>, vector<16x48xf32>, vector<16x48xf32> -> vector<64x48xf32>
    %c0_15 = arith.constant 0 : index
    %c0_16 = arith.constant 0 : index
    %36 = vector.load %arg3[%c0_15, %c0_16] : memref<64x48xf32, #tpu.memory_space<vmem>>, vector<64x48xf32>
    %37 = arith.addf %35, %36 : vector<64x48xf32>
    %cst_17 = arith.constant dense<0xFF800000> : vector<64xf32>
    %38 = vector.multi_reduction <maximumf>, %37, %cst_17 [1] : vector<64x48xf32> to vector<64xf32>
    %39 = vector.shape_cast %38 : vector<64xf32> to vector<64x1xf32>
    %40 = vector.broadcast %39 : vector<64x1xf32> to vector<64x48xf32>
    %41 = arith.subf %37, %40 : vector<64x48xf32>
    %42 = math.exp %41 : vector<64x48xf32>
    %cst_18 = arith.constant dense<0.000000e+00> : vector<64xf32>
    %43 = vector.multi_reduction <add>, %42, %cst_18 [1] : vector<64x48xf32> to vector<64xf32>
    %44 = vector.shape_cast %43 : vector<64xf32> to vector<64x1xf32>
    %45 = tpu.reciprocal %44 {approx = true} : vector<64x1xf32> -> vector<64x1xf32>
    %46 = arith.mulf %44, %45 : vector<64x1xf32>
    %cst_19 = arith.constant 2.000000e+00 : f32
    %47 = vector.broadcast %cst_19 : f32 to vector<64x1xf32>
    %48 = arith.subf %47, %46 : vector<64x1xf32>
    %49 = arith.mulf %45, %48 : vector<64x1xf32>
    %50 = vector.broadcast %49 : vector<64x1xf32> to vector<64x48xf32>
    %51 = arith.mulf %42, %50 : vector<64x48xf32>
    %52 = vector.extract_strided_slice %51 {offsets = [0, 0], sizes = [16, 48], strides = [1, 1]} : vector<64x48xf32> to vector<16x48xf32>
    %53 = vector.extract_strided_slice %22 {offsets = [0, 128], sizes = [48, 32], strides = [1, 1]} : vector<48x256xf32> to vector<48x32xf32>
    %cst_20 = arith.constant dense<0.000000e+00> : vector<16x32xf32>
    %54 = tpu.matmul %52, %53, %cst_20 {dimension_numbers = #tpu.dot_dimension_numbers<[1], [0], [0], [1], [0, 0, 1, 1], [], []>} : vector<16x48xf32>, vector<48x32xf32>, vector<16x32xf32> -> vector<16x32xf32>
    %55 = vector.extract_strided_slice %51 {offsets = [16, 0], sizes = [16, 48], strides = [1, 1]} : vector<64x48xf32> to vector<16x48xf32>
    %56 = vector.extract_strided_slice %22 {offsets = [0, 160], sizes = [48, 32], strides = [1, 1]} : vector<48x256xf32> to vector<48x32xf32>
    %cst_21 = arith.constant dense<0.000000e+00> : vector<16x32xf32>
    %57 = tpu.matmul %55, %56, %cst_21 {dimension_numbers = #tpu.dot_dimension_numbers<[1], [0], [0], [1], [0, 0, 1, 1], [], []>} : vector<16x48xf32>, vector<48x32xf32>, vector<16x32xf32> -> vector<16x32xf32>
    %58 = arith.addf %54, %57 : vector<16x32xf32>
    %59 = vector.extract_strided_slice %51 {offsets = [32, 0], sizes = [16, 48], strides = [1, 1]} : vector<64x48xf32> to vector<16x48xf32>
    %60 = vector.extract_strided_slice %22 {offsets = [0, 192], sizes = [48, 32], strides = [1, 1]} : vector<48x256xf32> to vector<48x32xf32>
    %cst_22 = arith.constant dense<0.000000e+00> : vector<16x32xf32>
    %61 = tpu.matmul %59, %60, %cst_22 {dimension_numbers = #tpu.dot_dimension_numbers<[1], [0], [0], [1], [0, 0, 1, 1], [], []>} : vector<16x48xf32>, vector<48x32xf32>, vector<16x32xf32> -> vector<16x32xf32>
    %62 = arith.addf %58, %61 : vector<16x32xf32>
    %63 = vector.extract_strided_slice %51 {offsets = [48, 0], sizes = [16, 48], strides = [1, 1]} : vector<64x48xf32> to vector<16x48xf32>
    %64 = vector.extract_strided_slice %22 {offsets = [0, 224], sizes = [48, 32], strides = [1, 1]} : vector<48x256xf32> to vector<48x32xf32>
    %cst_23 = arith.constant dense<0.000000e+00> : vector<16x32xf32>
    %65 = tpu.matmul %63, %64, %cst_23 {dimension_numbers = #tpu.dot_dimension_numbers<[1], [0], [0], [1], [0, 0, 1, 1], [], []>} : vector<16x48xf32>, vector<48x32xf32>, vector<16x32xf32> -> vector<16x32xf32>
    %66 = arith.addf %62, %65 : vector<16x32xf32>
    %c0_24 = arith.constant 0 : index
    %c0_25 = arith.constant 0 : index
    %67 = vector.load %arg4[%c0_24, %c0_25] : memref<16x32xf32, #tpu.memory_space<vmem>>, vector<16x32xf32>
    tpu.vector_store %arg4[%c0_24, %c0_25], %66 {strides = array<i32>} : memref<16x32xf32, #tpu.memory_space<vmem>>, vector<16x32xf32>,
    return
  }
}

</mosaic_0001>

<bundles_post_ra>
// kernel: tile.63
= control target key start
LH: loop header
LB: loop body
LE: loop exit
PB: predicated region body
PF: predicated region fallthrough
CT: control target
= control target key end

     0   :  { %s22_s0 = inlined_call_operand.vmem [shape: s32[8], index: 0, kind: input, shape index: {}]   ;;  %s23_s1 = inlined_call_operand.vmem [shape: s32[2,8], index: 1, kind: output, shape index: {}]  }
   0x1   :  { %v4_v0 = vld [vmem:[%s22_s0] ss:$0 sm:$0xff] }
   0x2   :  { %5 = vst [vmem:[%s23_s1] sm:$0x3] %v4_v0 }

// kernel: seq_compressor_attention.1
= control target key start
LH: loop header
LB: loop body
LE: loop exit
PB: predicated region body
PF: predicated region fallthrough
CT: control target
= control target key end

     0   :  { %vm36_vm0 = vcmask 261120   ;;  %s2145_s0 = inlined_call_operand.vmem [shape: f32[48,32], index: 0, kind: input, shape index: {}]   ;;  %s2146_s1 = inlined_call_operand.vmem [shape: f32[96,32], index: 1, kind: input, shape index: {}]   ;;  %s2147_s2 = inlined_call_operand.vmem [shape: f32[32,256], index: 2, kind: input, shape index: {}]   ;;  %s2148_s3 = inlined_call_operand.vmem [shape: f32[64,48], index: 3, kind: input, shape index: {}]   ;;  %s2149_s4 = inlined_call_operand.hbm [shape: f32[16,32], index: 4, kind: output, shape index: {}]  }
   0x1   :  { %v18_v0 = vld [vmem:[%s2145_s0] sm:$0xff]  ;;  %v20_v1 = vld [vmem:[%s2145_s0 + $0x10] sm:$0xff]  ;;  %v19_v2 = vld [vmem:[%s2145_s0 + $0x8] sm:$0xff] }
   0x2   :  { %v37_v3 = vsel %vm36_vm0, %v18_v0, 0.0  ;;  %v43_v4 = vsel %vm36_vm0, %v20_v1, 0.0  ;;  %v21_v5 = vld [vmem:[%s2145_s0 + $0x18] sm:$0xff] }
   0x3   :  { %38 = vadd.xlane.f32.xlu0 %v37_v3  ;;  %44 = vadd.xlane.f32.xlu1 %v43_v4 }
   0x4   :  { %9 = vsyncpa [#allocation3], 0  ;;  %v40_v6 = vsel %vm36_vm0, %v19_v2, 0.0  ;;  %v46_v7 = vsel %vm36_vm0, %v21_v5, 0.0  ;;  %v22_v8 = vld [vmem:[%s2145_s0 + $0x20] sm:$0xff]  ;;  %v23_v9 = vld [vmem:[%s2145_s0 + $0x28] sm:$0xff] }
   0x5   :  { %v49_v10 = vsel %vm36_vm0, %v22_v8, 0.0  ;;  %v52_v11 = vsel %vm36_vm0, %v23_v9, 0.0  ;;  %v129_v42 = vld [vmem:[%s2147_s2 + $0x8] sm:$0xff]  ;;  %v131_v43 = vld [vmem:[%s2147_s2 + $0x18] sm:$0xff]  ;;  %v128_v45 = vld [vmem:[%s2147_s2] sm:$0xff]  ;;  %v1769_v54 = vmov 0.0  }
   0x6   :  { %v1451_v44 = vpack.c.bf16 %v131_v43, %v129_v42  ;;  %v130_v46 = vld [vmem:[%s2147_s2 + $0x10] sm:$0xff]  ;;  %v133_v48 = vld [vmem:[%s2147_s2 + $0x28] sm:$0xff]  ;;  %v135_v49 = vld [vmem:[%s2147_s2 + $0x38] sm:$0xff]  ;;  %218 = vmatprep.mubr.f32.mxu0 %v1769_v54  ;;  %s1770_s12 = smov 64   ;;  %vm273_vm1 = vcmask 130048   ;;  %s1772_s13 = smov 32  }
   0x7   :  { %41 = vadd.xlane.f32.xlu0 %v40_v6  ;;  %47 = vadd.xlane.f32.xlu1 %v46_v7  ;;  %v1453_v47 = vpack.c.bf16 %v130_v46, %v128_v45  ;;  %v1455_v50 = vpack.c.bf16 %v135_v49, %v133_v48  ;;  %v132_v51 = vld [vmem:[%s2147_s2 + $0x20] sm:$0xff]  ;;  %v134_v52 = vld [vmem:[%s2147_s2 + $0x30] sm:$0xff]  ;;  %s1773_s14 = smov 112   ;;  %s1774_s15 = smov 16   ;;  %vm1960_vm2 = vmpackc.low %vm273_vm1, %vm273_vm1  ;;  %vm702_vm3 = vcmask 392192  }
   0x8   :  { %1452 = vmatprep.subr.bf16.mxu0 %v1451_v44  ;;  %v1457_v53 = vpack.c.bf16 %v134_v52, %v132_v51  ;;  %v35_v44 = vld [vmem:[%s2146_s1 + $0x58] sm:$0xff]  ;;  %s1775_s2 = smov 96   ;;  %s1776_s16 = smov 80  }
   0x9   :  { %1454 = vmatpush1.bf16.msra.mxu0 %v1453_v47 }
   0xa   :  { %1456 = vmatprep.subr.bf16.mxu0 %v1455_v50 }
   0xb   :  { %50 = vadd.xlane.f32.xlu0 %v49_v10  ;;  %53 = vadd.xlane.f32.xlu1 %v52_v11  ;;  %v24_v10 = vld [vmem:[%s2146_s1] sm:$0xff] }
   0xd   :  { %1458 = vmatpush1.bf16.msra.mxu0 %v1457_v53 }
  0x90   :  { %v39_v12 = vpop.xlane.xlu0 %38  ;;  %v45_v13 = vpop.xlane.xlu1 %44 }
  0x91   :  { %v56_v14 = vmul.f32 0.03125, %v39_v12  ;;  %v58_v15 = vmul.f32 0.03125, %v45_v13  ;;  %v30_v12 = vld [vmem:[%s2146_s1 + $0x30] sm:$0xff] }
  0x93   :  { %v1829_v16 = vsub.f32 %v18_v0, %v56_v14  ;;  %v1831_v17 = vsub.f32 %v20_v1, %v58_v15  ;;  %v25_v15 = vld [vmem:[%s2146_s1 + $0x8] sm:$0xff] }
  0x94   :  { %v42_v18 = vpop.xlane.xlu0 %41  ;;  %v48_v19 = vpop.xlane.xlu1 %47 }
  0x95   :  { %v57_v20 = vmul.f32 0.03125, %v42_v18  ;;  %v59_v21 = vmul.f32 0.03125, %v48_v19  ;;  %v68_v22 = vmul.f32 %v1829_v16, %v1829_v16  ;;  %v70_v23 = vmul.f32 %v1831_v17, %v1831_v17 }
  0x97   :  { %v1837_v24 = vsub.f32 %v19_v2, %v57_v20  ;;  %v1839_v25 = vsub.f32 %v21_v5, %v59_v21  ;;  %v74_v26 = vsel %vm36_vm0, %v68_v22, 0.0  ;;  %v80_v29 = vsel %vm36_vm0, %v70_v23, 0.0  ;;  %v31_v21 = vld [vmem:[%s2146_s1 + $0x38] sm:$0xff] }
  0x98   :  { %75 = vadd.xlane.f32.xlu0 %v74_v26  ;;  %v51_v27 = vpop.xlane.xlu0 %50  ;;  %v54_v28 = vpop.xlane.xlu1 %53 }
  0x99   :  { %v60_v30 = vmul.f32 0.03125, %v51_v27  ;;  %v61_v31 = vmul.f32 0.03125, %v54_v28  ;;  %v69_v32 = vmul.f32 %v1837_v24, %v1837_v24  ;;  %v71_v33 = vmul.f32 %v1839_v25, %v1839_v25 }
  0x9b   :  { %v1847_v34 = vsub.f32 %v22_v8, %v60_v30  ;;  %v1849_v35 = vsub.f32 %v23_v9, %v61_v31  ;;  %v77_v36 = vsel %vm36_vm0, %v69_v32, 0.0  ;;  %v83_v37 = vsel %vm36_vm0, %v71_v33, 0.0  ;;  %v32_v30 = vld [vmem:[%s2146_s1 + $0x40] sm:$0xff]  ;;  %v27_v31 = vld [vmem:[%s2146_s1 + $0x18] sm:$0xff] }
  0x9c   :  { %81 = vadd.xlane.f32.xlu0 %v80_v29  ;;  %78 = vadd.xlane.f32.xlu1 %v77_v36 }
  0x9d   :  { %v72_v38 = vmul.f32 %v1847_v34, %v1847_v34  ;;  %v73_v39 = vmul.f32 %v1849_v35, %v1849_v35 }
  0x9f   :  { %v86_v40 = vsel %vm36_vm0, %v72_v38, 0.0  ;;  %v89_v41 = vsel %vm36_vm0, %v73_v39, 0.0 }
  0xa0   :  { %84 = vadd.xlane.f32.xlu1 %v83_v37  ;;  %87 = vadd.xlane.f32.xlu0 %v86_v40  ;;  %v28_v37 = vld [vmem:[%s2146_s1 + $0x20] sm:$0xff] }
  0xa4   :  { %90 = vadd.xlane.f32.xlu1 %v89_v41  ;;  %v29_v41 = vld [vmem:[%s2146_s1 + $0x28] sm:$0xff] }
 0x125   :  { %v76_v55 = vpop.xlane.xlu0 %75 }
 0x126   :  { %v92_v56 = vmul.f32 0.03125, %v76_v55 }
 0x128   :  { %v98_v57 = vadd.f32 1e-05, %v92_v56 }
 0x129   :  { %v79_v58 = vpop.xlane.xlu1 %78  ;;  %v82_v59 = vpop.xlane.xlu0 %81 }
 0x12a   :  { %1701 = vrsqrt.f32 %v98_v57  ;;  %v93_v60 = vmul.f32 0.03125, %v79_v58  ;;  %v94_v61 = vmul.f32 0.03125, %v82_v59 }
 0x12c   :  { %v99_v62 = vadd.f32 1e-05, %v93_v60  ;;  %v100_v63 = vadd.f32 1e-05, %v94_v61 }
 0x12d   :  { %v85_v0 = vpop.xlane.xlu1 %84  ;;  %v88_v1 = vpop.xlane.xlu0 %87 }
 0x12e   :  { %1703 = vrsqrt.f32 %v99_v62  ;;  %v95_v2 = vmul.f32 0.03125, %v85_v0  ;;  %v96_v3 = vmul.f32 0.03125, %v88_v1 }
 0x12f   :  { %1705 = vrsqrt.f32 %v100_v63 }
 0x130   :  { %v101_v4 = vadd.f32 1e-05, %v95_v2  ;;  %v102_v5 = vadd.f32 1e-05, %v96_v3 }
 0x131   :  { %v91_v6 = vpop.xlane.xlu1 %90 }
 0x132   :  { %1707 = vrsqrt.f32 %v101_v4  ;;  %v97_v7 = vmul.f32 0.03125, %v91_v6 }
 0x133   :  { %1709 = vrsqrt.f32 %v102_v5  ;;  %v691_v5 = vld [vmem:[%s2148_s3 + $0x28] sm:$0xff] }
 0x134   :  { %v1702_v8 = vpop.eup %1701  ;;  %v103_v9 = vadd.f32 1e-05, %v97_v7 }
 0x135   :  { %v110_v11 = vmul.f32 %v1702_v8, %v1829_v16  ;;  %v26_v16 = vld [vmem:[%s2146_s1 + $0x10] sm:$0xff] }
 0x136   :  { %1711 = vrsqrt.f32 %v103_v9 }
 0x137   :  { %v116_v13 = vmul.f32 %v110_v11, %v24_v10 }
 0x138   :  { %v1704_v14 = vpop.eup %1703 }
 0x139   :  { %v1706_v18 = vpop.eup %1705  ;;  %v122_v19 = vadd.f32 %v116_v13, %v30_v12  ;;  %v111_v20 = vmul.f32 %v1704_v14, %v1837_v24 }
 0x13a   :  { %v112_v22 = vmul.f32 %v1706_v18, %v1831_v17 }
 0x13b   :  { %1221 = vmatmul.mubr.msk.f32.vlgmr.msra.gmra.mrb[0].mxu0 %vm36_vm0, %v122_v19  ;;  %v117_v23 = vmul.f32 %v111_v20, %v25_v15 }
 0x13c   :  { %v1708_v26 = vpop.eup %1707  ;;  %224 = vmatprep.mubr.f32.mxu0 %v1769_v54  ;;  %v118_v28 = vmul.f32 %v112_v22, %v26_v16 }
 0x13d   :  { %v123_v27 = vadd.f32 %v117_v23, %v31_v21  ;;  %v113_v24 = vmul.f32 %v1708_v26, %v1839_v25  ;;  %v1710_v29 = vpop.eup %1709  ;;  %v33_v25 = vld [vmem:[%s2146_s1 + $0x48] sm:$0xff] }
 0x13e   :  { %v124_v17 = vadd.f32 %v118_v28, %v32_v30  ;;  %v114_v33 = vmul.f32 %v1710_v29, %v1847_v34  ;;  %v34_v34 = vld [vmem:[%s2146_s1 + $0x50] sm:$0xff]  ;;  %s1771_s1 = smov 48  }
 0x13f   :  { %1222 = vmatmul.mubr.msk.f32.gmra.mrb[2].mxu0 %vm36_vm0, %v123_v27  ;;  %v119_v32 = vmul.f32 %v113_v24, %v27_v31 }
 0x140   :  { %230 = vmatprep.mubr.f32.mxu0 %v1769_v54  ;;  %v1712_v36 = vpop.eup %1711  ;;  %v120_v39 = vmul.f32 %v114_v33, %v28_v37 }
 0x141   :  { %v125_v38 = vadd.f32 %v119_v32, %v33_v25  ;;  %v115_v40 = vmul.f32 %v1712_v36, %v1849_v35 }
 0x142   :  { %v126_v42 = vadd.f32 %v120_v39, %v34_v34 }
 0x143   :  { %1223 = vmatmul.mubr.msk.f32.gmra.mrb[4].mxu0 %vm36_vm0, %v124_v17  ;;  %v121_v43 = vmul.f32 %v115_v40, %v29_v41 }
 0x144   :  { %236 = vmatprep.mubr.f32.mxu0 %v1769_v54 }
 0x145   :  { %v127_v35 = vadd.f32 %v121_v43, %v35_v44 }
 0x147   :  { %1224 = vmatmul.mubr.msk.f32.gmra.mrb[6].mxu0 %vm36_vm0, %v125_v38 }
 0x148   :  { %242 = vmatprep.mubr.f32.mxu0 %v1769_v54 }
 0x14b   :  { %1225 = vmatmul.mubr.msk.f32.gmra.mrb[8].mxu0 %vm36_vm0, %v126_v42 }
 0x14c   :  { %248 = vmatprep.mubr.f32.mxu0 %v1769_v54 }
 0x14f   :  { %1226 = vmatmul.mubr.msk.f32.gmra.mrb[10].mxu0 %vm36_vm0, %v127_v35 }
 0x20e   :  { %v220_v45 = vpop.f32.mrb[0].mxu0 }
 0x20f   :  { %v222_v46 = vpop.f32.mrb[1].mxu0 }
 0x212   :  { %v226_v47 = vpop.f32.mrb[2].mxu0 }
 0x213   :  { %v228_v48 = vpop.f32.mrb[3].mxu0  ;;  %v1596_v49 = vpack.i.bf16 %v226_v47, %v220_v45 }
 0x214   :  { %v1937_v50 = vpack.i.bf16 %v228_v48, %v222_v46  ;;  %v1939_v51 = vpack.c.bf16 %v228_v48, %v222_v46 }
 0x215   :  { %1597 = vrot.lane.b32.xlu0 %v1596_v49, %s1770_s12 }
 0x216   :  { %v232_v52 = vpop.f32.mrb[4].mxu0 }
 0x217   :  { %v234_v53 = vpop.f32.mrb[5].mxu0 }
 0x21a   :  { %v238_v55 = vpop.f32.mrb[6].mxu0 }
 0x21b   :  { %v240_v54 = vpop.f32.mrb[7].mxu0  ;;  %v1616_v56 = vpack.i.bf16 %v238_v55, %v232_v52 }
 0x21c   :  { %v1942_v57 = vpack.i.bf16 %v240_v54, %v234_v53  ;;  %v1944_v58 = vpack.c.bf16 %v240_v54, %v234_v53 }
 0x21d   :  { %1617 = vrot.lane.b32.xlu0 %v1616_v56, %s1771_s1  ;;  %1602 = vrot.lane.b32.xlu1 %v1616_v56, %s1770_s12 }
 0x21e   :  { %v244_v59 = vpop.f32.mrb[8].mxu0 }
 0x21f   :  { %v246_v60 = vpop.f32.mrb[9].mxu0  ;;  %1343 = vmatprep.mubr.msk.f32.mxu0 %vm273_vm1, %v244_v59 }
 0x221   :  { %1627 = vrot.lane.b32.xlu0 %v1596_v49, %s1772_s13 }
 0x222   :  { %v250_v61 = vpop.f32.mrb[10].mxu0 }
 0x223   :  { %v252_v62 = vpop.f32.mrb[11].mxu0  ;;  %v1606_v63 = vpack.i.bf16 %v250_v61, %v244_v59 }
 0x224   :  { %v1949_v0 = vpack.i.bf16 %v252_v62, %v246_v60  ;;  %v1951_v1 = vpack.c.bf16 %v252_v62, %v246_v60 }
 0x225   :  { %367 = vrot.lane.b32.xlu0 %v250_v61, %s1773_s14  ;;  %1607 = vrot.lane.b32.xlu1 %v1606_v63, %s1770_s12 }
 0x229   :  { %1637 = vrot.lane.b32.xlu0 %v1596_v49, %s1774_s15  ;;  %1612 = vrot.lane.b32.xlu1 %v1596_v49, %s1771_s1 }
 0x22d   :  { %1647 = vrot.lane.b32.xlu0 %v1616_v56, %s1774_s15  ;;  %1622 = vrot.lane.b32.xlu1 %v1606_v63, %s1771_s1 }
 0x231   :  { %474 = vrot.lane.b32.xlu0 %v250_v61, %s1775_s2  ;;  %365 = vrot.lane.b32.xlu1 %v244_v59, %s1773_s14 }
 0x235   :  { %579 = vrot.lane.b32.xlu0 %v244_v59, %s1776_s16  ;;  %1632 = vrot.lane.b32.xlu1 %v1616_v56, %s1772_s13 }
 0x239   :  { %1642 = vrot.lane.b32.xlu1 %v1606_v63, %s1772_s13 }
 0x23d   :  { %472 = vrot.lane.b32.xlu1 %v244_v59, %s1775_s2 }
 0x241   :  { %1652 = vrot.lane.b32.xlu1 %v1606_v63, %s1774_s15  ;;  %v689_v63 = vld [vmem:[%s2148_s3 + $0x18] sm:$0xff] }
 0x245   :  { %581 = vrot.lane.b32.xlu1 %v250_v61, %s1776_s16 }
 0x287   :  { %v1598_v2 = vpop.permute.xlu0 %1597 }
 0x288   :  { %v1600_v3 = vunpack.i.h.bf16 %v1598_v2  ;;  %v1599_v4 = vunpack.i.l.bf16 %v1598_v2  ;;  %v688_v2 = vld [vmem:[%s2148_s3 + $0x10] sm:$0xff] }
 0x28a   :  { %v1459_v6 = vpack.c.bf16 %v1600_v3, %v1599_v4 }
 0x28c   :  { %1461 = vmatprep.subr.msk.bf16.mxu0 %vm1960_vm2, %v1459_v6 }
 0x28d   :  { %1464 = vmatpush3.bf16.xpose.msk.msra.mxu0 %vm1960_vm2, %v1459_v6  ;;  %v686_v6 = vld [vmem:[%s2148_s3] sm:$0xff] }
 0x28f   :  { %v1603_v7 = vpop.permute.xlu1 %1602  ;;  %v1618_v8 = vpop.permute.xlu0 %1617 }
 0x290   :  { %v1605_v9 = vunpack.i.h.bf16 %v1603_v7  ;;  %v1604_v10 = vunpack.i.l.bf16 %v1603_v7  ;;  %v1620_v28 = vunpack.i.h.bf16 %v1618_v8  ;;  %v1619_v24 = vunpack.i.l.bf16 %v1618_v8 }
 0x292   :  { %v1465_v11 = vpack.c.bf16 %v1605_v9, %v1604_v10  ;;  %v1483_v30 = vpack.c.bf16 %v1620_v28, %v1619_v24 }
 0x293   :  { %v1628_v12 = vpop.permute.xlu0 %1627 }
 0x294   :  { %v1630_v13 = vunpack.i.h.bf16 %v1628_v12  ;;  %v1629_v14 = vunpack.i.l.bf16 %v1628_v12  ;;  %1467 = vmatprep.subr.msk.bf16.mxu0 %vm1960_vm2, %v1465_v11 }
 0x295   :  { %1470 = vmatpush3.bf16.xpose.msk.msra.mxu0 %vm1960_vm2, %v1465_v11 }
 0x296   :  { %v1495_v15 = vpack.c.bf16 %v1630_v13, %v1629_v14 }
 0x297   :  { %v1608_v18 = vpop.permute.xlu1 %1607  ;;  %v368_v31 = vpop.permute.xlu0 %367 }
 0x298   :  { %v1610_v19 = vunpack.i.h.bf16 %v1608_v18  ;;  %v1609_v20 = vunpack.i.l.bf16 %v1608_v18  ;;  %1497 = vmatprep.subr.msk.bf16.mxu1 %vm1960_vm2, %v1495_v15 }
 0x299   :  { %1500 = vmatpush3.bf16.xpose.msk.msra.mxu1 %vm1960_vm2, %v1495_v15  ;;  %v687_v15 = vld [vmem:[%s2148_s3 + $0x8] sm:$0xff] }
 0x29a   :  { %v1471_v21 = vpack.c.bf16 %v1610_v19, %v1609_v20 }
 0x29b   :  { %v1613_v16 = vpop.permute.xlu1 %1612  ;;  %v1638_v37 = vpop.permute.xlu0 %1637 }
 0x29c   :  { %v1615_v22 = vunpack.i.h.bf16 %v1613_v16  ;;  %v1614_v23 = vunpack.i.l.bf16 %v1613_v16  ;;  %1473 = vmatprep.subr.msk.bf16.mxu0 %vm1960_vm2, %v1471_v21  ;;  %v1640_v44 = vunpack.i.h.bf16 %v1638_v37  ;;  %v1639_v35 = vunpack.i.l.bf16 %v1638_v37 }
 0x29d   :  { %1476 = vmatpush3.bf16.xpose.msk.msra.mxu0 %vm1960_vm2, %v1471_v21  ;;  %v690_v21 = vld [vmem:[%s2148_s3 + $0x20] sm:$0xff] }
 0x29e   :  { %v1477_v26 = vpack.c.bf16 %v1615_v22, %v1614_v23  ;;  %v1513_v46 = vpack.c.bf16 %v1640_v44, %v1639_v35 }
 0x29f   :  { %v1623_v27 = vpop.permute.xlu1 %1622  ;;  %v1648_v45 = vpop.permute.xlu0 %1647 }
 0x2a0   :  { %1479 = vmatprep.subr.msk.bf16.mxu0 %vm1960_vm2, %v1477_v26  ;;  %v1625_v32 = vunpack.i.h.bf16 %v1623_v27  ;;  %v1624_v33 = vunpack.i.l.bf16 %v1623_v27  ;;  %v1650_v48 = vunpack.i.h.bf16 %v1648_v45  ;;  %v1649_v49 = vunpack.i.l.bf16 %v1648_v45  ;;  %v692_v27 = vld [vmem:[%s2148_s3 + $0x30] sm:$0xff] }
 0x2a2   :  { %v1489_v40 = vpack.c.bf16 %v1625_v32, %v1624_v33  ;;  %v1519_v52 = vpack.c.bf16 %v1650_v48, %v1649_v49 }
 0x2a3   :  { %v366_v29 = vpop.permute.xlu1 %365  ;;  %v475_v47 = vpop.permute.xlu0 %474 }
 0x2a4   :  { %1344 = vmatmul.mubr.msk.f32.vlgmr.msra.gmra.mrb[12].mxu0 %vm273_vm1, %v250_v61 }
 0x2a5   :  { %1482 = vmatpush3.bf16.xpose.msk.msra.mxu0 %vm1960_vm2, %v1477_v26  ;;  %1358 = vmatprep.mubr.msk.f32.mxu0 %vm273_vm1, %v366_v29  ;;  %v693_v26 = vld [vmem:[%s2148_s3 + $0x38] sm:$0xff]  ;;  %s1777_s3 = smov [#allocation2]  }
 0x2a6   :  { %1485 = vmatprep.subr.msk.bf16.mxu0 %vm1960_vm2, %v1483_v30  ;;  %s1210_s6 = sshll.u32 %s1777_s3, 4  ;;  %s1211_s6 = int_to_ptr.vmem [resolvable:$true] %s1210_s6 }
 0x2a7   :  { %v1633_v17 = vpop.permute.xlu1 %1632  ;;  %v580_v53 = vpop.permute.xlu0 %579  ;;  %s1745_s7 = scalar_lea.vmem %s1211_s6, 256  ;;  %p1750_p1 = scmp.lt.s32.totalorder %s1211_s6, %s1211_s6 }
 0x2a8   :  { %v1635_v36 = vunpack.i.h.bf16 %v1633_v17  ;;  %v1634_v25 = vunpack.i.l.bf16 %v1633_v17  ;;  %p1746_p0 = scmp.ne.s32.totalorder %s1211_s6, %s1745_s7  ;;  %p1751_p2 = scmp.lt.s32.totalorder %s1745_s7, %s1745_s7 }
 0x2aa   :  { %v1501_v38 = vpack.c.bf16 %v1635_v36, %v1634_v25  ;;  %p1752_p3 = por %p1751_p2, %p1750_p1 }
 0x2ab   :  { %v1643_v39 = vpop.permute.xlu1 %1642 }
 0x2ac   :  { %v1645_v34 = vunpack.i.h.bf16 %v1643_v39  ;;  %v1644_v41 = vunpack.i.l.bf16 %v1643_v39  ;;  %1503 = vmatprep.subr.msk.bf16.mxu1 %vm1960_vm2, %v1501_v38  ;;  %p1753_p4 = pnand %p1752_p3, %p1746_p0 }
 0x2ad   :  { %1488 = vmatpush3.bf16.xpose.msk.msra.mxu0 %vm1960_vm2, %v1483_v30  ;;  %1506 = vmatpush3.bf16.xpose.msk.msra.mxu1 %vm1960_vm2, %v1501_v38 }
 0x2ae   :  { %v1507_v42 = vpack.c.bf16 %v1645_v34, %v1644_v41  ;;  %1491 = vmatprep.subr.msk.bf16.mxu0 %vm1960_vm2, %v1489_v40 }
 0x2af   :  { %v473_v43 = vpop.permute.xlu1 %472 }
 0x2b0   :  { %1509 = vmatprep.subr.msk.bf16.mxu1 %vm1960_vm2, %v1507_v42  ;;  %1373 = vmatprep.mubr.msk.f32.mxu1 %vm273_vm1, %v473_v43 }
 0x2b3   :  { %v1653_v55 = vpop.permute.xlu1 %1652 }
 0x2b4   :  { %v1655_v54 = vunpack.i.h.bf16 %v1653_v55  ;;  %v1654_v56 = vunpack.i.l.bf16 %v1653_v55 }
 0x2b5   :  { %1494 = vmatpush3.bf16.xpose.msk.msra.mxu0 %vm1960_vm2, %v1489_v40  ;;  %1512 = vmatpush3.bf16.xpose.msk.msra.mxu1 %vm1960_vm2, %v1507_v42 }
 0x2b6   :  { %1515 = vmatprep.subr.msk.bf16.mxu0 %vm1960_vm2, %v1513_v46  ;;  %v1525_v59 = vpack.c.bf16 %v1655_v54, %v1654_v56 }
 0x2b7   :  { %v582_v60 = vpop.permute.xlu1 %581 }
 0x2bc   :  { %1359 = vmatmul.mubr.msk.f32.vlgmr.msra.gmra.mrb[14].mxu0 %vm273_vm1, %v368_v31  ;;  %1374 = vmatmul.mubr.msk.f32.vlgmr.msra.gmra.mrb[0].mxu1 %vm273_vm1, %v475_v47 }
 0x2bd   :  { %1518 = vmatpush3.bf16.xpose.msk.msra.mxu0 %vm1960_vm2, %v1513_v46  ;;  %1388 = vmatprep.mubr.msk.f32.mxu0 %vm273_vm1, %v580_v53 }
 0x2be   :  { %1521 = vmatprep.subr.msk.bf16.mxu0 %vm1960_vm2, %v1519_v52 }
 0x2c5   :  { %1524 = vmatpush3.bf16.xpose.msk.msra.mxu0 %vm1960_vm2, %v1519_v52 }
 0x2c6   :  { %1527 = vmatprep.subr.msk.bf16.mxu0 %vm1960_vm2, %v1525_v59 }
 0x2cd   :  { %1530 = vmatpush3.bf16.xpose.msk.msra.mxu0 %vm1960_vm2, %v1525_v59 }
 0x2d4   :  { %1389 = vmatmul.mubr.msk.f32.vlgmr.msra.gmra.mrb[16].mxu0 %vm273_vm1, %v582_v60 }
 0x377   :  { %v1345_v61 = vpop.f32.mrb[12].mxu0 }
 0x378   :  { %v356_v62 = vpop.f32.mrb[13].mxu0  ;;  %v695_v19 = vadd.f32 %v1345_v61, %v687_v15 }
 0x379   :  { %v694_v13 = vadd.f32 %v686_v6, %v356_v62 }
 0x37a   :  { %v706_v22 = vsel %vm702_vm3, %v695_v19, -inf }
 0x37b   :  { %v703_v20 = vsel %vm702_vm3, %v694_v13, -inf }
 0x38f   :  { %v1360_v3 = vpop.f32.mrb[14].mxu0  ;;  %v1375_v4 = vpop.f32.mrb[0].mxu1 }
 0x390   :  { %v697_v7 = vadd.f32 %v1360_v3, %v689_v63  ;;  %v463_v8 = vpop.f32.mrb[15].mxu0  ;;  %v570_v9 = vpop.f32.mrb[1].mxu1  ;;  %v699_v11 = vadd.f32 %v1375_v4, %v691_v5 }
 0x391   :  { %v696_v10 = vadd.f32 %v688_v2, %v463_v8  ;;  %v698_v16 = vadd.f32 %v690_v21, %v570_v9 }
 0x392   :  { %v712_v12 = vsel %vm702_vm3, %v697_v7, -inf  ;;  %v718_v18 = vsel %vm702_vm3, %v699_v11, -inf }
 0x393   :  { %713 = vmax.xlane.f32.xlu1 %v712_v12  ;;  %v709_v14 = vsel %vm702_vm3, %v696_v10, -inf  ;;  %v715_v23 = vsel %vm702_vm3, %v698_v16, -inf }
 0x394   :  { %710 = vmax.xlane.f32.xlu0 %v709_v14 }
 0x397   :  { %719 = vmax.xlane.f32.xlu1 %v718_v18 }
 0x398   :  { %704 = vmax.xlane.f32.xlu0 %v703_v20 }
 0x39c   :  { %707 = vmax.xlane.f32.xlu0 %v706_v22 }
 0x3a0   :  { %716 = vmax.xlane.f32.xlu0 %v715_v23 }
 0x3a7   :  { %v1390_v28 = vpop.f32.mrb[16].mxu0 }
 0x3a8   :  { %v2049_v24 = vadd.f32 %v1390_v28, %v693_v26  ;;  %v677_v29 = vpop.f32.mrb[17].mxu0 }
 0x3a9   :  { %v2051_v30 = vadd.f32 %v692_v27, %v677_v29 }
 0x3aa   :  { %v724_v31 = vsel %vm702_vm3, %v2049_v24, -inf }
 0x3ab   :  { %725 = vmax.xlane.f32.xlu1 %v724_v31  ;;  %v721_v17 = vsel %vm702_vm3, %v2051_v30, -inf }
 0x3ac   :  { %722 = vmax.xlane.f32.xlu0 %v721_v17 }
 0x3bc   :  { %1662 = vrot.lane.b32.xlu1 %v1942_v57, %s1775_s2 }
 0x3c2   :  { %1657 = vrot.lane.b32.xlu0 %v1937_v50, %s1775_s2 }
 0x420   :  { %v714_v32 = vpop.xlane.xlu1 %713 }
 0x421   :  { %v711_v33 = vpop.xlane.xlu0 %710  ;;  %v730_v44 = vsub.f32 %v697_v7, %v714_v32 }
 0x422   :  { %v729_v39 = vsub.f32 %v696_v10, %v711_v33 }
 0x423   :  { %v741_v47 = vmul.f32 1.442695, %v730_v44 }
 0x424   :  { %v720_v36 = vpop.xlane.xlu1 %719  ;;  %v739_v43 = vmul.f32 1.442695, %v729_v39 }
 0x425   :  { %v732_v25 = vsub.f32 %v699_v11, %v720_v36  ;;  %v705_v37 = vpop.xlane.xlu0 %704 }
 0x426   :  { %v727_v38 = vsub.f32 %v694_v13, %v705_v37 }
 0x427   :  { %v745_v40 = vmul.f32 1.442695, %v732_v25 }
 0x428   :  { %v735_v34 = vmul.f32 1.442695, %v727_v38 }
 0x429   :  { %1713 = vpow2.f32 %v745_v40  ;;  %v708_v41 = vpop.xlane.xlu0 %707 }
 0x42a   :  { %v728_v42 = vsub.f32 %v695_v19, %v708_v41  ;;  %1715 = vpow2.f32 %v735_v34 }
 0x42c   :  { %v737_v35 = vmul.f32 1.442695, %v728_v42 }
 0x42d   :  { %v717_v45 = vpop.xlane.xlu0 %716 }
 0x42e   :  { %1717 = vpow2.f32 %v737_v35  ;;  %v731_v46 = vsub.f32 %v698_v16, %v717_v45 }
 0x42f   :  { %1719 = vpow2.f32 %v739_v43 }
 0x430   :  { %v743_v48 = vmul.f32 1.442695, %v731_v46 }
 0x432   :  { %1721 = vpow2.f32 %v743_v48 }
 0x433   :  { %v2061_v49 = vpop.eup %1713  ;;  %1723 = vpow2.f32 %v741_v47 }
 0x434   :  { %v766_v52 = vsel %vm702_vm3, %v2061_v49, 0.0  ;;  %v2065_v53 = vpop.eup %1715 }
 0x435   :  { %767 = vadd.xlane.f32.xlu0 %v766_v52  ;;  %v751_v56 = vsel %vm702_vm3, %v2065_v53, 0.0 }
 0x438   :  { %v2067_v55 = vpop.eup %1717  ;;  %v726_v54 = vpop.xlane.xlu1 %725 }
 0x439   :  { %v2071_v59 = vpop.eup %1719  ;;  %752 = vadd.xlane.f32.xlu0 %v751_v56  ;;  %v723_v60 = vpop.xlane.xlu0 %722  ;;  %v754_v61 = vsel %vm702_vm3, %v2067_v55, 0.0  ;;  %v734_v13 = vsub.f32 %v2049_v24, %v726_v54 }
 0x43a   :  { %755 = vadd.xlane.f32.xlu1 %v754_v61  ;;  %v757_v2 = vsel %vm702_vm3, %v2071_v59, 0.0  ;;  %v733_v15 = vsub.f32 %v2051_v30, %v723_v60 }
 0x43b   :  { %v749_v14 = vmul.f32 1.442695, %v734_v13 }
 0x43c   :  { %v2075_v62 = vpop.eup %1721  ;;  %v1663_v63 = vpop.permute.xlu1 %1662  ;;  %v747_v18 = vmul.f32 1.442695, %v733_v15 }
 0x43d   :  { %758 = vadd.xlane.f32.xlu0 %v757_v2  ;;  %v1658_v3 = vpop.permute.xlu0 %1657  ;;  %v763_v4 = vsel %vm702_vm3, %v2075_v62, 0.0  ;;  %v2081_v5 = vpop.eup %1723  ;;  %v1665_v6 = vunpack.i.h.bf16 %v1663_v63  ;;  %v1664_v7 = vunpack.i.l.bf16 %v1663_v63  ;;  %1725 = vpow2.f32 %v749_v14 }
 0x43e   :  { %v1660_v8 = vunpack.i.h.bf16 %v1658_v3  ;;  %v1659_v9 = vunpack.i.l.bf16 %v1658_v3  ;;  %764 = vadd.xlane.f32.xlu1 %v763_v4  ;;  %v760_v11 = vsel %vm702_vm3, %v2081_v5, 0.0  ;;  %1727 = vpow2.f32 %v747_v18 }
 0x43f   :  { %v1535_v12 = vpack.c.bf16 %v1665_v6, %v1664_v7 }
 0x440   :  { %v1531_v10 = vpack.c.bf16 %v1660_v8, %v1659_v9 }
 0x442   :  { %761 = vadd.xlane.f32.xlu1 %v760_v11  ;;  %1532 = vmatprep.subr.bf16.mxu1 %v1531_v10 }
 0x443   :  { %1534 = vmatpush3.bf16.msra.mxu1 %v1531_v10 }
 0x444   :  { %1536 = vmatprep.subr.bf16.mxu1 %v1535_v12 }
 0x447   :  { %1538 = vmatpush3.bf16.msra.mxu1 %v1535_v12  ;;  %v2099_v19 = vpop.eup %1725 }
 0x448   :  { %v772_v20 = vsel %vm702_vm3, %v2099_v19, 0.0  ;;  %v2103_v21 = vpop.eup %1727 }
 0x453   :  { %1672 = vrot.lane.b32.xlu1 %v1937_v50, %s1770_s12  ;;  %1667 = vrot.lane.b32.xlu0 %v1949_v0, %s1775_s2 }
 0x457   :  { %1682 = vrot.lane.b32.xlu1 %v1949_v0, %s1770_s12  ;;  %1677 = vrot.lane.b32.xlu0 %v1942_v57, %s1770_s12 }
 0x45b   :  { %1687 = vrot.lane.b32.xlu0 %v1937_v50, %s1772_s13  ;;  %v769_v50 = vsel %vm702_vm3, %v2103_v21, 0.0 }
 0x45f   :  { %1697 = vrot.lane.b32.xlu0 %v1949_v0, %s1772_s13 }
 0x47b   :  { %773 = vadd.xlane.f32.xlu1 %v772_v20 }
 0x47f   :  { %770 = vadd.xlane.f32.xlu1 %v769_v50 }
 0x490   :  { %1692 = vrot.lane.b32.xlu1 %v1942_v57, %s1772_s13 }
 0x4c2   :  { %v768_v0 = vpop.xlane.xlu0 %767 }
 0x4c6   :  { %v753_v16 = vpop.xlane.xlu0 %752 }
 0x4c7   :  { %v756_v22 = vpop.xlane.xlu1 %755  ;;  %1729 = vrcp.f32 %v753_v16 }
 0x4ca   :  { %v759_v23 = vpop.xlane.xlu0 %758 }
 0x4cb   :  { %1731 = vrcp.f32 %v759_v23  ;;  %v765_v26 = vpop.xlane.xlu1 %764 }
 0x4ce   :  { %v1668_v27 = vpop.permute.xlu0 %1667 }
 0x4cf   :  { %v1670_v28 = vunpack.i.h.bf16 %v1668_v27  ;;  %v1669_v24 = vunpack.i.l.bf16 %v1668_v27  ;;  %v762_v29 = vpop.xlane.xlu1 %761 }
 0x4d0   :  { %1733 = vrcp.f32 %v762_v29 }
 0x4d1   :  { %v1539_v30 = vpack.c.bf16 %v1670_v28, %v1669_v24  ;;  %v1730_v31 = vpop.eup %1729  ;;  %1735 = vrcp.f32 %v756_v22 }
 0x4d2   :  { %1737 = vrcp.f32 %v765_v26  ;;  %v783_v57 = vmul.f32 %v1730_v31, %v753_v16 }
 0x4d3   :  { %1540 = vmatprep.subr.bf16.mxu1 %v1539_v30  ;;  %1739 = vrcp.f32 %v768_v0  ;;  %v1673_v47 = vpop.permute.xlu1 %1672 }
 0x4d4   :  { %1542 = vmatpush3.bf16.msra.mxu1 %v1539_v30  ;;  %v791_v25 = vsub.f32 2.0, %v783_v57  ;;  %v1675_v54 = vunpack.i.h.bf16 %v1673_v47  ;;  %v1674_v56 = vunpack.i.l.bf16 %v1673_v47 }
 0x4d5   :  { %v1732_v17 = vpop.eup %1731  ;;  %1544 = vmatprep.subr.bf16.mxu1 %v1939_v51 }
 0x4d6   :  { %v785_v32 = vmul.f32 %v1732_v17, %v759_v23  ;;  %v799_v41 = vmul.f32 %v1730_v31, %v791_v25  ;;  %v1555_v3 = vpack.c.bf16 %v1675_v54, %v1674_v56 }
 0x4d8   :  { %v793_v33 = vsub.f32 2.0, %v785_v32  ;;  %v807_v45 = vmul.f32 %v2065_v53, %v799_v41 }
 0x4da   :  { %v1734_v36 = vpop.eup %1733  ;;  %v801_v37 = vmul.f32 %v1732_v17, %v793_v33 }
 0x4db   :  { %v786_v38 = vmul.f32 %v1734_v36, %v762_v29  ;;  %v1736_v34 = vpop.eup %1735 }
 0x4dc   :  { %v809_v39 = vmul.f32 %v2071_v59, %v801_v37  ;;  %v1738_v42 = vpop.eup %1737  ;;  %v784_v44 = vmul.f32 %v1736_v34, %v756_v22  ;;  %v1678_v59 = vpop.permute.xlu0 %1677 }
 0x4dd   :  { %v794_v40 = vsub.f32 2.0, %v786_v38  ;;  %v787_v46 = vmul.f32 %v1738_v42, %v765_v26  ;;  %v1740_v53 = vpop.eup %1739  ;;  %v1680_v63 = vunpack.i.h.bf16 %v1678_v59  ;;  %v1679_v2 = vunpack.i.l.bf16 %v1678_v59 }
 0x4de   :  { %1403 = vmatprep.mubr.msk.f32.mxu1 %vm702_vm3, %v809_v39  ;;  %v792_v48 = vsub.f32 2.0, %v784_v44  ;;  %v788_v4 = vmul.f32 %v1740_v53, %v768_v0 }
 0x4df   :  { %v802_v43 = vmul.f32 %v1734_v36, %v794_v40  ;;  %v795_v52 = vsub.f32 2.0, %v787_v46  ;;  %v1559_v7 = vpack.c.bf16 %v1680_v63, %v1679_v2 }
 0x4e0   :  { %v800_v60 = vmul.f32 %v1736_v34, %v792_v48  ;;  %v1688_v9 = vpop.permute.xlu0 %1687  ;;  %v796_v10 = vsub.f32 2.0, %v788_v4 }
 0x4e1   :  { %v810_v35 = vmul.f32 %v2081_v5, %v802_v43  ;;  %v803_v61 = vmul.f32 %v1738_v42, %v795_v52  ;;  %v1690_v11 = vunpack.i.h.bf16 %v1688_v9  ;;  %v1689_v12 = vunpack.i.l.bf16 %v1688_v9 }
 0x4e2   :  { %v808_v5 = vmul.f32 %v2067_v55, %v800_v60  ;;  %v804_v13 = vmul.f32 %v1740_v53, %v796_v10 }
 0x4e3   :  { %1404 = vmatmul.mubr.msk.f32.vlgmr.msra.gmra.mrb[2].mxu1 %vm702_vm3, %v810_v35  ;;  %v811_v6 = vmul.f32 %v2075_v62, %v803_v61  ;;  %v1567_v55 = vpack.c.bf16 %v1690_v11, %v1689_v12 }
 0x4e4   :  { %1546 = vmatpush3.bf16.msra.mxu1 %v1939_v51  ;;  %1418 = vmatprep.mubr.msk.f32.mxu1 %vm702_vm3, %v807_v45  ;;  %v1683_v51 = vpop.permute.xlu1 %1682  ;;  %v812_v62 = vmul.f32 %v2061_v49, %v804_v13  ;;  %v1698_v18 = vpop.permute.xlu0 %1697 }
 0x4e5   :  { %1548 = vmatprep.subr.bf16.mxu1 %v1944_v58  ;;  %v1685_v8 = vunpack.i.h.bf16 %v1683_v51  ;;  %v1700_v50 = vunpack.i.h.bf16 %v1698_v18  ;;  %v1699_v0 = vunpack.i.l.bf16 %v1698_v18 }
 0x4e7   :  { %v1575_v28 = vpack.c.bf16 %v1700_v50, %v1699_v0 }
 0x4e8   :  { %1550 = vmatpush3.bf16.msra.mxu1 %v1944_v58  ;;  %v1684_v58 = vunpack.i.l.bf16 %v1683_v51 }
 0x4e9   :  { %1552 = vmatprep.subr.bf16.mxu1 %v1951_v1 }
 0x4ec   :  { %1554 = vmatpush3.bf16.msra.mxu1 %v1951_v1  ;;  %v1563_v1 = vpack.c.bf16 %v1685_v8, %v1684_v58 }
 0x4ed   :  { %1556 = vmatprep.subr.bf16.mxu1 %v1555_v3 }
 0x4ef   :  { %1419 = vmatmul.mubr.msk.f32.vlgmr.msra.gmra.mrb[2].mxu1 %vm702_vm3, %v808_v5 }
 0x4f0   :  { %1558 = vmatpush3.bf16.msra.mxu1 %v1555_v3  ;;  %1433 = vmatprep.mubr.msk.f32.mxu1 %vm702_vm3, %v811_v6 }
 0x4f1   :  { %1560 = vmatprep.subr.bf16.mxu1 %v1559_v7 }
 0x4f4   :  { %1562 = vmatpush3.bf16.msra.mxu1 %v1559_v7 }
 0x4f5   :  { %1564 = vmatprep.subr.bf16.mxu1 %v1563_v1 }
 0x4f8   :  { %1566 = vmatpush3.bf16.msra.mxu1 %v1563_v1 }
 0x4f9   :  { %1568 = vmatprep.subr.bf16.mxu1 %v1567_v55 }
 0x4fb   :  { %1434 = vmatmul.mubr.msk.f32.vlgmr.msra.gmra.mrb[2].mxu1 %vm702_vm3, %v812_v62 }
 0x4fc   :  { %1570 = vmatpush3.bf16.msra.mxu1 %v1567_v55 }
 0x508   :  { %v774_v14 = vpop.xlane.xlu1 %773 }
 0x509   :  { %1741 = vrcp.f32 %v774_v14 }
 0x50c   :  { %v771_v15 = vpop.xlane.xlu1 %770 }
 0x50d   :  { %1743 = vrcp.f32 %v771_v15 }
 0x510   :  { %v1693_v20 = vpop.permute.xlu1 %1692 }
 0x511   :  { %v1695_v16 = vunpack.i.h.bf16 %v1693_v20  ;;  %v1694_v22 = vunpack.i.l.bf16 %v1693_v20 }
 0x513   :  { %v1742_v23 = vpop.eup %1741  ;;  %v1571_v26 = vpack.c.bf16 %v1695_v16, %v1694_v22 }
 0x514   :  { %v790_v27 = vmul.f32 %v1742_v23, %v774_v14 }
 0x515   :  { %1572 = vmatprep.subr.bf16.mxu1 %v1571_v26 }
 0x516   :  { %1574 = vmatpush3.bf16.msra.mxu1 %v1571_v26  ;;  %v798_v24 = vsub.f32 2.0, %v790_v27 }
 0x517   :  { %v1744_v49 = vpop.eup %1743  ;;  %1576 = vmatprep.subr.bf16.mxu1 %v1575_v28 }
 0x518   :  { %v789_v29 = vmul.f32 %v1744_v49, %v771_v15  ;;  %v806_v31 = vmul.f32 %v1742_v23, %v798_v24 }
 0x51a   :  { %v797_v30 = vsub.f32 2.0, %v789_v29  ;;  %1578 = vmatpush3.bf16.msra.mxu1 %v1575_v28  ;;  %v814_v32 = vmul.f32 %v2099_v19, %v806_v31 }
 0x51c   :  { %v805_v17 = vmul.f32 %v1744_v49, %v797_v30 }
 0x51e   :  { %v813_v57 = vmul.f32 %v2103_v21, %v805_v17 }
 0x520   :  { %1448 = vmatprep.mubr.msk.f32.mxu1 %vm702_vm3, %v813_v57 }
 0x521   :  { %1449 = vmatmul.mubr.msk.f32.vlgmr.msra.gmra.mrb[2].mxu1 %vm702_vm3, %v814_v32 }
 0x5f4   :  { %v1450_v33 = vpop.f32.mrb[2].mxu1 }
 0x5f5   :  { %1204 = vst.msk [vmem:[#allocation2 + $0x8] sm:$0xff] %vm36_vm0, %v1450_v33  ;;  %v1192_v36 = vpop.f32.mrb[3].mxu1 }
 0x5f6   :  { %1203 = vst.msk [vmem:[#allocation2] sm:$0xff] %vm36_vm0, %v1192_v36 }
 0x5f7   :  { %1756 = shalt.err (!%p1753_p4)
}
 0x5f8   :  { %s1757_s10 = scalar_lea.hbm %s2149_s4, 256 }
 0x5f9   :  { %p1758_p5 = scmp.ne.s32.totalorder %s2149_s4, %s1757_s10  ;;  %p1761_p6 = scmp.lt.u32.totalorder %s1757_s10, %s2149_s4 }
 0x5fb   :  { %p1763_p7 = pnand %p1761_p6, %p1758_p5 }
 0x5fd   :  { %1766 = shalt.err (!%p1763_p7)
}
 0x5fe   :  { %s1778_s14 = smov 128   ;;  %s1779_s15 = smov 8  }
 0x5ff   :  { %1216 = dma.vmem_to_hbm [thread:$0]  %s1211_s6, 256, %s2149_s4, [#allocation3], %s1778_s14, %s1778_s14, %s1779_s15  }
 0x600   :  { %1767 = dma.done.wait [#allocation3], 256  }
 0x601   :  { %1768 = vsyncadd [#allocation3], 4294967040 }
 0x602   :  { %1220 = vsyncpa [#allocation3], 1 }

</bundles_post_ra>
